<compile_context>
chip_gen: v6e
topology: v6e:2x2x1
jax: 0.10.0
libtpu: 0.0.40
codegen_flags: <defaults>
</compile_context>

<pallas_src>
import functools

import jax
import jax.numpy as jnp
from jax.experimental import pallas as pl
from jax.experimental.pallas import tpu as pltpu

HOP_COUNT = 3
EPS = 1e-8  # torch.cosine_similarity eps


def amn_kernel(data_ref, out_ref, *, seq, emb, hops):
    """3-hop memory-network recurrence, batch N on the lane axis.

    data_ref: [(S + 1 + hops)*E, W]  packed:
        rows s*E + e            -> input_embeddings[n, s, e]      (cols 0..N-1)
        rows S*E .. S*E+E-1     -> cols 0..S-1: embedded parameter vector^T
                                   col  S:      parameter vector
                                   cols S+1+h:  hop_b[h]
                                   col  S+1+H:  out_w, (row 0, col S+2+H): out_b
        rows S*E+(1+h)*E ..     -> hop_w[h]  (E_out, E_in) in cols 0..E-1
    out_ref:  [1, N]  lane-dense output
    """
    S, E = seq, emb
    data = data_ref[...]
    W = data.shape[1]                 # lane width (>= N)
    N = out_ref.shape[1]
    base = S * E

    # Hop-invariant pieces (single load, static sub-vreg slices).
    ie = [data[s * E:(s + 1) * E, :] for s in range(S)]          # S x [E, W]
    sq = ie[0] * ie[0]
    for s in range(1, S):
        sq = sq + ie[s] * ie[s]
    n1 = jnp.sqrt(sq)                                            # [E, W]

    pv_emb_t = data[base:base + E, 0:S]                          # [E, S]
    pv_col = data[base:base + E, S:S + 1]                        # [E, 1]
    out_w = data[base:base + E, S + 1 + hops:S + 2 + hops]       # [E, 1]
    out_b = data[base:base + 1, S + 2 + hops:S + 3 + hops]       # [1, 1]

    # memory_vector: parameter_vector broadcast per batch column.  (S == E.)
    mem = jnp.broadcast_to(pv_col, (S, W))                       # [S, W]

    for h in range(hops):
        # --- cosine_similarity(input_embeddings, memory, dim=S) per (e, n)
        num = ie[0] * mem[0:1, :]
        for s in range(1, S):
            num = num + ie[s] * mem[s:s + 1, :]                  # [E, W]
        n2 = jnp.sqrt(jnp.sum(mem * mem, axis=0, keepdims=True))  # [1, W]
        cos = num * pl.reciprocal(jnp.maximum(n1 * n2, EPS), approx=False)

        # --- softmax over the E axis (sublanes)
        m = jnp.max(cos, axis=0, keepdims=True)
        p = jnp.exp(cos - m)
        aw = p * pl.reciprocal(jnp.sum(p, axis=0, keepdims=True), approx=False)

        # --- weighted sum against the (constant) embedded parameter vector:
        #     ws[e, n] = sum_k pv_emb[k, e] * aw[k, n]     (VPU FMAs, no MXU)
        ws = pv_emb_t[:, 0:1] * aw[0:1, :]
        for k in range(1, S):
            ws = ws + pv_emb_t[:, k:k + 1] * aw[k:k + 1, :]      # [E, W]

        # --- hop layer: Linear(E, E) + ReLU as unrolled VPU broadcast-FMAs
        w_h = data[base + (1 + h) * E:base + (2 + h) * E, 0:E]   # [E_out, E_in]
        b_h = data[base:base + E, S + 1 + h:S + 2 + h]           # [E, 1]
        lin = w_h[:, 0:1] * ws[0:1, :]
        for j in range(1, E):
            lin = lin + w_h[:, j:j + 1] * ws[j:j + 1, :]
        mem = mem + jnp.maximum(lin + b_h, 0.0)                  # S == E

    # --- output layer: Linear(E, 1) -> lane-dense [1, N]
    res = jnp.sum(mem * out_w, axis=0, keepdims=True) + out_b    # [1, W]
    out_ref[...] = res[:, 0:N]


def attention_memory_network(input_vectors, parameter_vector, params):
    emb_table = params["embedding"].astype(jnp.float32)   # [V, E]
    hop_w = params["hop_w"].astype(jnp.float32)            # [HOPS, E, E] (out, in)
    hop_b = params["hop_b"].astype(jnp.float32)             # [HOPS, E]
    out_w = params["out_w"].astype(jnp.float32)              # [1, E]
    out_b = params["out_b"].astype(jnp.float32)               # [1]

    N, S = input_vectors.shape
    V, E = emb_table.shape
    H = HOP_COUNT
    assert S == E, "PyTorch forward only type-checks when seq_len == embedding_dim"
    pv = parameter_vector.astype(jnp.float32)                 # [S]

    width = max(N, S + 3 + H, E)

    # ---- XLA glue: embedding gathers + transpose to batch-on-lanes --------
    ie = jnp.take(emb_table, input_vectors, axis=0)           # [N, S, E]
    ie_t = ie.reshape(N, S * E).T                             # [S*E, N], s-major
    ie_t = jnp.pad(ie_t, ((0, 0), (0, width - N)))            # [S*E, width]

    # The SDPA branch is constant (softmax over size-1 axis == 1), so
    # output_vec == parameter_vector; embed it once here.
    # TODO(synk): jnp.take clips out-of-range ids where torch nn.Embedding
    # would raise; fine for pv = [1,2,3,4] with V = 5.
    pv_emb = jnp.take(emb_table, pv.astype(jnp.int32), axis=0)    # [S, E]

    # ---- Pack every parameter below the data -> ONE input DMA total -------
    par = jnp.zeros(((1 + H) * E, width), jnp.float32)
    par = par.at[0:E, 0:S].set(pv_emb.T)                      # [E, S]
    par = par.at[0:S, S].set(pv)
    for h in range(H):
        par = par.at[0:E, S + 1 + h].set(hop_b[h])
    par = par.at[0:E, S + 1 + H].set(out_w[0])
    par = par.at[0, S + 2 + H].set(out_b[0])
    par = par.at[E:, 0:E].set(hop_w.reshape(H * E, E))

    data = jnp.concatenate([ie_t, par], axis=0)               # [(S+1+H)*E, width]

    # Gridless: at N=17 the whole problem is a few vregs; the kernel is
    # launch/DMA-bound, so no tiling or pipelining is warranted.
    # TODO(synk): if N is scaled up, add a grid over lane-blocks of N with
    # dimension_semantics=("parallel",) so the second TensorCore can help.
    vmem = pl.BlockSpec(memory_space=pltpu.MemorySpace.VMEM)
    out = pl.pallas_call(
        functools.partial(amn_kernel, seq=S, emb=E, hops=H),
        out_shape=jax.ShapeDtypeStruct((1, N), jnp.float32),
        in_specs=[vmem],
        out_specs=vmem,
    )(data)
    return out[0]                                             # [N]


def reference_forward(input_vectors, parameter_vector, params):
    """Pure-JAX mirror of the PyTorch forward (for correctness check)."""
    emb = params["embedding"]
    ie = emb[input_vectors]                                   # [N, S, E]
    self_a = input_vectors.astype(jnp.float32)
    mem = parameter_vector                                    # [4]
    for h in range(HOP_COUNT):
        x2 = jnp.broadcast_to(mem[..., None], ie.shape)
        num = jnp.sum(ie * x2, axis=1)
        n1 = jnp.sqrt(jnp.sum(ie * ie, axis=1))
        n2 = jnp.sqrt(jnp.sum(x2 * x2, axis=1))
        cos = num / jnp.maximum(n1 * n2, EPS)
        aw = jax.nn.softmax(cos, axis=1)
        qv = parameter_vector[None, :]
        scores = self_a @ qv.T / jnp.sqrt(4.0)
        aw1 = jax.nn.softmax(scores, axis=-1)
        ov = aw1 @ qv
        ov_e = emb[ov.astype(jnp.int32)]                      # [N, S, E]
        ws = jnp.squeeze(jnp.swapaxes(ov_e, 1, 2) @ aw[:, :, None], -1)
        hop_out = jax.nn.relu(ws @ params["hop_w"][h].T + params["hop_b"][h])
        mem = mem + hop_out
    out = mem @ params["out_w"].T + params["out_b"]
    return out[:, 0]


def init_params(num_vectors, embedding_dim, key):
    k1, k2, k3, k4, k5 = jax.random.split(key, 5)
    bound = 1.0 / jnp.sqrt(jnp.float32(embedding_dim))
    return {
        "embedding": jax.random.normal(k1, (num_vectors, embedding_dim),
                                       jnp.float32),
        "hop_w": jax.random.uniform(k2, (HOP_COUNT, embedding_dim, embedding_dim),
                                    jnp.float32, -bound, bound),
        "hop_b": jax.random.uniform(k3, (HOP_COUNT, embedding_dim),
                                    jnp.float32, -bound, bound),
        "out_w": jax.random.uniform(k4, (1, embedding_dim),
                                    jnp.float32, -bound, bound),
        "out_b": jax.random.uniform(k5, (1,), jnp.float32, -bound, bound),
    }


if __name__ == "__main__":
    input_vectors = jnp.array(
        [[0, 1, 2, 3], [0, 1, 2, 1], [0, 1, 2, 2], [0, 1, 2, 4], [0, 2, 1, 1],
         [0, 2, 1, 2], [0, 2, 1, 3], [0, 2, 1, 4], [0, 2, 2, 1], [0, 2, 2, 2],
         [0, 2, 2, 3], [0, 2, 2, 1], [0, 1, 2, 3], [1, 2, 3, 3], [1, 2, 3, 2],
         [1, 1, 3, 3], [1, 2, 2, 2]], dtype=jnp.int32)          # [17, 4]
    parameter_vector = jnp.array([1.0, 2.0, 3.0, 4.0], dtype=jnp.float32)

    num_vectors, embedding_dim = 5, 4
    params = init_params(num_vectors, embedding_dim, jax.random.PRNGKey(0))

    out = attention_memory_network(input_vectors, parameter_vector, params)
    out = jax.block_until_ready(out)

    ref = reference_forward(input_vectors, parameter_vector, params)
    assert out.shape == (input_vectors.shape[0],), out.shape
    assert bool(jnp.all(jnp.isfinite(out)))
    assert bool(jnp.allclose(out, ref, rtol=1e-4, atol=1e-4)), (out, ref)
    print("KERNEL_OK")
</pallas_src>

<mosaic_0001>
module attributes {stable_mosaic.version = 11 : i64} {
  func.func @amn_kernel(%arg0: memref<32x17xf32, #tpu.memory_space<vmem>>, %arg1: memref<1x17xf32, #tpu.memory_space<vmem>>) attributes {dimension_semantics = [], scalar_prefetch = 0 : i64, scratch_operands = 0 : i64, tpu.core_type = #tpu.core_type<tc>} {
    %c0 = arith.constant 0 : index
    %c0_0 = arith.constant 0 : index
    %0 = vector.load %arg0[%c0, %c0_0] : memref<32x17xf32, #tpu.memory_space<vmem>>, vector<32x17xf32>
    %1 = vector.extract_strided_slice %0 {offsets = [0, 0], sizes = [4, 17], strides = [1, 1]} : vector<32x17xf32> to vector<4x17xf32>
    %2 = vector.extract_strided_slice %0 {offsets = [4, 0], sizes = [4, 17], strides = [1, 1]} : vector<32x17xf32> to vector<4x17xf32>
    %3 = vector.extract_strided_slice %0 {offsets = [8, 0], sizes = [4, 17], strides = [1, 1]} : vector<32x17xf32> to vector<4x17xf32>
    %4 = vector.extract_strided_slice %0 {offsets = [12, 0], sizes = [4, 17], strides = [1, 1]} : vector<32x17xf32> to vector<4x17xf32>
    %5 = arith.mulf %1, %1 : vector<4x17xf32>
    %6 = arith.mulf %2, %2 : vector<4x17xf32>
    %7 = arith.addf %5, %6 : vector<4x17xf32>
    %8 = arith.mulf %3, %3 : vector<4x17xf32>
    %9 = arith.addf %7, %8 : vector<4x17xf32>
    %10 = arith.mulf %4, %4 : vector<4x17xf32>
    %11 = arith.addf %9, %10 : vector<4x17xf32>
    %12 = math.sqrt %11 : vector<4x17xf32>
    %13 = vector.extract_strided_slice %0 {offsets = [16, 0], sizes = [4, 4], strides = [1, 1]} : vector<32x17xf32> to vector<4x4xf32>
    %14 = vector.extract_strided_slice %0 {offsets = [16, 4], sizes = [4, 1], strides = [1, 1]} : vector<32x17xf32> to vector<4x1xf32>
    %15 = vector.extract_strided_slice %0 {offsets = [16, 8], sizes = [4, 1], strides = [1, 1]} : vector<32x17xf32> to vector<4x1xf32>
    %16 = vector.extract_strided_slice %0 {offsets = [16, 9], sizes = [1, 1], strides = [1, 1]} : vector<32x17xf32> to vector<1x1xf32>
    %17 = vector.shape_cast %14 : vector<4x1xf32> to vector<4x1xf32>
    %18 = vector.broadcast %17 : vector<4x1xf32> to vector<4x17xf32>
    %19 = vector.extract_strided_slice %18 {offsets = [0, 0], sizes = [1, 17], strides = [1, 1]} : vector<4x17xf32> to vector<1x17xf32>
    %20 = vector.broadcast %19 : vector<1x17xf32> to vector<4x17xf32>
    %21 = arith.mulf %1, %20 : vector<4x17xf32>
    %22 = vector.extract_strided_slice %18 {offsets = [1, 0], sizes = [1, 17], strides = [1, 1]} : vector<4x17xf32> to vector<1x17xf32>
    %23 = vector.broadcast %22 : vector<1x17xf32> to vector<4x17xf32>
    %24 = arith.mulf %2, %23 : vector<4x17xf32>
    %25 = arith.addf %21, %24 : vector<4x17xf32>
    %26 = vector.extract_strided_slice %18 {offsets = [2, 0], sizes = [1, 17], strides = [1, 1]} : vector<4x17xf32> to vector<1x17xf32>
    %27 = vector.broadcast %26 : vector<1x17xf32> to vector<4x17xf32>
    %28 = arith.mulf %3, %27 : vector<4x17xf32>
    %29 = arith.addf %25, %28 : vector<4x17xf32>
    %30 = vector.extract_strided_slice %18 {offsets = [3, 0], sizes = [1, 17], strides = [1, 1]} : vector<4x17xf32> to vector<1x17xf32>
    %31 = vector.broadcast %30 : vector<1x17xf32> to vector<4x17xf32>
    %32 = arith.mulf %4, %31 : vector<4x17xf32>
    %33 = arith.addf %29, %32 : vector<4x17xf32>
    %34 = arith.mulf %18, %18 : vector<4x17xf32>
    %cst = arith.constant dense<0.000000e+00> : vector<17xf32>
    %35 = vector.multi_reduction <add>, %34, %cst [0] : vector<4x17xf32> to vector<17xf32>
    %36 = vector.shape_cast %35 : vector<17xf32> to vector<1x17xf32>
    %37 = math.sqrt %36 : vector<1x17xf32>
    %38 = vector.broadcast %37 : vector<1x17xf32> to vector<4x17xf32>
    %39 = arith.mulf %12, %38 : vector<4x17xf32>
    %cst_1 = arith.constant 9.99999993E-9 : f32
    %40 = vector.broadcast %cst_1 : f32 to vector<4x17xf32>
    %41 = arith.maximumf %39, %40 : vector<4x17xf32>
    %42 = tpu.reciprocal %41 : vector<4x17xf32> -> vector<4x17xf32>
    %43 = arith.mulf %33, %42 : vector<4x17xf32>
    %cst_2 = arith.constant dense<0xFF800000> : vector<17xf32>
    %44 = vector.multi_reduction <maximumf>, %43, %cst_2 [0] : vector<4x17xf32> to vector<17xf32>
    %45 = vector.shape_cast %44 : vector<17xf32> to vector<1x17xf32>
    %46 = vector.broadcast %45 : vector<1x17xf32> to vector<4x17xf32>
    %47 = arith.subf %43, %46 : vector<4x17xf32>
    %48 = math.exp %47 : vector<4x17xf32>
    %cst_3 = arith.constant dense<0.000000e+00> : vector<17xf32>
    %49 = vector.multi_reduction <add>, %48, %cst_3 [0] : vector<4x17xf32> to vector<17xf32>
    %50 = vector.shape_cast %49 : vector<17xf32> to vector<1x17xf32>
    %51 = tpu.reciprocal %50 : vector<1x17xf32> -> vector<1x17xf32>
    %52 = vector.broadcast %51 : vector<1x17xf32> to vector<4x17xf32>
    %53 = arith.mulf %48, %52 : vector<4x17xf32>
    %54 = vector.extract_strided_slice %13 {offsets = [0, 0], sizes = [4, 1], strides = [1, 1]} : vector<4x4xf32> to vector<4x1xf32>
    %55 = vector.extract_strided_slice %53 {offsets = [0, 0], sizes = [1, 17], strides = [1, 1]} : vector<4x17xf32> to vector<1x17xf32>
    %56 = vector.broadcast %54 : vector<4x1xf32> to vector<4x17xf32>
    %57 = vector.broadcast %55 : vector<1x17xf32> to vector<4x17xf32>
    %58 = arith.mulf %56, %57 : vector<4x17xf32>
    %59 = vector.extract_strided_slice %13 {offsets = [0, 1], sizes = [4, 1], strides = [1, 1]} : vector<4x4xf32> to vector<4x1xf32>
    %60 = vector.extract_strided_slice %53 {offsets = [1, 0], sizes = [1, 17], strides = [1, 1]} : vector<4x17xf32> to vector<1x17xf32>
    %61 = vector.broadcast %59 : vector<4x1xf32> to vector<4x17xf32>
    %62 = vector.broadcast %60 : vector<1x17xf32> to vector<4x17xf32>
    %63 = arith.mulf %61, %62 : vector<4x17xf32>
    %64 = arith.addf %58, %63 : vector<4x17xf32>
    %65 = vector.extract_strided_slice %13 {offsets = [0, 2], sizes = [4, 1], strides = [1, 1]} : vector<4x4xf32> to vector<4x1xf32>
    %66 = vector.extract_strided_slice %53 {offsets = [2, 0], sizes = [1, 17], strides = [1, 1]} : vector<4x17xf32> to vector<1x17xf32>
    %67 = vector.broadcast %65 : vector<4x1xf32> to vector<4x17xf32>
    %68 = vector.broadcast %66 : vector<1x17xf32> to vector<4x17xf32>
    %69 = arith.mulf %67, %68 : vector<4x17xf32>
    %70 = arith.addf %64, %69 : vector<4x17xf32>
    %71 = vector.extract_strided_slice %13 {offsets = [0, 3], sizes = [4, 1], strides = [1, 1]} : vector<4x4xf32> to vector<4x1xf32>
    %72 = vector.extract_strided_slice %53 {offsets = [3, 0], sizes = [1, 17], strides = [1, 1]} : vector<4x17xf32> to vector<1x17xf32>
    %73 = vector.broadcast %71 : vector<4x1xf32> to vector<4x17xf32>
    %74 = vector.broadcast %72 : vector<1x17xf32> to vector<4x17xf32>
    %75 = arith.mulf %73, %74 : vector<4x17xf32>
    %76 = arith.addf %70, %75 : vector<4x17xf32>
    %77 = vector.extract_strided_slice %0 {offsets = [20, 0], sizes = [4, 4], strides = [1, 1]} : vector<32x17xf32> to vector<4x4xf32>
    %78 = vector.extract_strided_slice %0 {offsets = [16, 5], sizes = [4, 1], strides = [1, 1]} : vector<32x17xf32> to vector<4x1xf32>
    %79 = vector.extract_strided_slice %77 {offsets = [0, 0], sizes = [4, 1], strides = [1, 1]} : vector<4x4xf32> to vector<4x1xf32>
    %80 = vector.extract_strided_slice %76 {offsets = [0, 0], sizes = [1, 17], strides = [1, 1]} : vector<4x17xf32> to vector<1x17xf32>
    %81 = vector.broadcast %79 : vector<4x1xf32> to vector<4x17xf32>
    %82 = vector.broadcast %80 : vector<1x17xf32> to vector<4x17xf32>
    %83 = arith.mulf %81, %82 : vector<4x17xf32>
    %84 = vector.extract_strided_slice %77 {offsets = [0, 1], sizes = [4, 1], strides = [1, 1]} : vector<4x4xf32> to vector<4x1xf32>
    %85 = vector.extract_strided_slice %76 {offsets = [1, 0], sizes = [1, 17], strides = [1, 1]} : vector<4x17xf32> to vector<1x17xf32>
    %86 = vector.broadcast %84 : vector<4x1xf32> to vector<4x17xf32>
    %87 = vector.broadcast %85 : vector<1x17xf32> to vector<4x17xf32>
    %88 = arith.mulf %86, %87 : vector<4x17xf32>
    %89 = arith.addf %83, %88 : vector<4x17xf32>
    %90 = vector.extract_strided_slice %77 {offsets = [0, 2], sizes = [4, 1], strides = [1, 1]} : vector<4x4xf32> to vector<4x1xf32>
    %91 = vector.extract_strided_slice %76 {offsets = [2, 0], sizes = [1, 17], strides = [1, 1]} : vector<4x17xf32> to vector<1x17xf32>
    %92 = vector.broadcast %90 : vector<4x1xf32> to vector<4x17xf32>
    %93 = vector.broadcast %91 : vector<1x17xf32> to vector<4x17xf32>
    %94 = arith.mulf %92, %93 : vector<4x17xf32>
    %95 = arith.addf %89, %94 : vector<4x17xf32>
    %96 = vector.extract_strided_slice %77 {offsets = [0, 3], sizes = [4, 1], strides = [1, 1]} : vector<4x4xf32> to vector<4x1xf32>
    %97 = vector.extract_strided_slice %76 {offsets = [3, 0], sizes = [1, 17], strides = [1, 1]} : vector<4x17xf32> to vector<1x17xf32>
    %98 = vector.broadcast %96 : vector<4x1xf32> to vector<4x17xf32>
    %99 = vector.broadcast %97 : vector<1x17xf32> to vector<4x17xf32>
    %100 = arith.mulf %98, %99 : vector<4x17xf32>
    %101 = arith.addf %95, %100 : vector<4x17xf32>
    %102 = vector.broadcast %78 : vector<4x1xf32> to vector<4x17xf32>
    %103 = arith.addf %101, %102 : vector<4x17xf32>
    %cst_4 = arith.constant 0.000000e+00 : f32
    %104 = vector.broadcast %cst_4 : f32 to vector<4x17xf32>
    %105 = arith.maximumf %103, %104 : vector<4x17xf32>
    %106 = arith.addf %18, %105 : vector<4x17xf32>
    %107 = vector.extract_strided_slice %106 {offsets = [0, 0], sizes = [1, 17], strides = [1, 1]} : vector<4x17xf32> to vector<1x17xf32>
    %108 = vector.broadcast %107 : vector<1x17xf32> to vector<4x17xf32>
    %109 = arith.mulf %1, %108 : vector<4x17xf32>
    %110 = vector.extract_strided_slice %106 {offsets = [1, 0], sizes = [1, 17], strides = [1, 1]} : vector<4x17xf32> to vector<1x17xf32>
    %111 = vector.broadcast %110 : vector<1x17xf32> to vector<4x17xf32>
    %112 = arith.mulf %2, %111 : vector<4x17xf32>
    %113 = arith.addf %109, %112 : vector<4x17xf32>
    %114 = vector.extract_strided_slice %106 {offsets = [2, 0], sizes = [1, 17], strides = [1, 1]} : vector<4x17xf32> to vector<1x17xf32>
    %115 = vector.broadcast %114 : vector<1x17xf32> to vector<4x17xf32>
    %116 = arith.mulf %3, %115 : vector<4x17xf32>
    %117 = arith.addf %113, %116 : vector<4x17xf32>
    %118 = vector.extract_strided_slice %106 {offsets = [3, 0], sizes = [1, 17], strides = [1, 1]} : vector<4x17xf32> to vector<1x17xf32>
    %119 = vector.broadcast %118 : vector<1x17xf32> to vector<4x17xf32>
    %120 = arith.mulf %4, %119 : vector<4x17xf32>
    %121 = arith.addf %117, %120 : vector<4x17xf32>
    %122 = arith.mulf %106, %106 : vector<4x17xf32>
    %cst_5 = arith.constant dense<0.000000e+00> : vector<17xf32>
    %123 = vector.multi_reduction <add>, %122, %cst_5 [0] : vector<4x17xf32> to vector<17xf32>
    %124 = vector.shape_cast %123 : vector<17xf32> to vector<1x17xf32>
    %125 = math.sqrt %124 : vector<1x17xf32>
    %126 = vector.broadcast %125 : vector<1x17xf32> to vector<4x17xf32>
    %127 = arith.mulf %12, %126 : vector<4x17xf32>
    %cst_6 = arith.constant 9.99999993E-9 : f32
    %128 = vector.broadcast %cst_6 : f32 to vector<4x17xf32>
    %129 = arith.maximumf %127, %128 : vector<4x17xf32>
    %130 = tpu.reciprocal %129 : vector<4x17xf32> -> vector<4x17xf32>
    %131 = arith.mulf %121, %130 : vector<4x17xf32>
    %cst_7 = arith.constant dense<0xFF800000> : vector<17xf32>
    %132 = vector.multi_reduction <maximumf>, %131, %cst_7 [0] : vector<4x17xf32> to vector<17xf32>
    %133 = vector.shape_cast %132 : vector<17xf32> to vector<1x17xf32>
    %134 = vector.broadcast %133 : vector<1x17xf32> to vector<4x17xf32>
    %135 = arith.subf %131, %134 : vector<4x17xf32>
    %136 = math.exp %135 : vector<4x17xf32>
    %cst_8 = arith.constant dense<0.000000e+00> : vector<17xf32>
    %137 = vector.multi_reduction <add>, %136, %cst_8 [0] : vector<4x17xf32> to vector<17xf32>
    %138 = vector.shape_cast %137 : vector<17xf32> to vector<1x17xf32>
    %139 = tpu.reciprocal %138 : vector<1x17xf32> -> vector<1x17xf32>
    %140 = vector.broadcast %139 : vector<1x17xf32> to vector<4x17xf32>
    %141 = arith.mulf %136, %140 : vector<4x17xf32>
    %142 = vector.extract_strided_slice %13 {offsets = [0, 0], sizes = [4, 1], strides = [1, 1]} : vector<4x4xf32> to vector<4x1xf32>
    %143 = vector.extract_strided_slice %141 {offsets = [0, 0], sizes = [1, 17], strides = [1, 1]} : vector<4x17xf32> to vector<1x17xf32>
    %144 = vector.broadcast %142 : vector<4x1xf32> to vector<4x17xf32>
    %145 = vector.broadcast %143 : vector<1x17xf32> to vector<4x17xf32>
    %146 = arith.mulf %144, %145 : vector<4x17xf32>
    %147 = vector.extract_strided_slice %13 {offsets = [0, 1], sizes = [4, 1], strides = [1, 1]} : vector<4x4xf32> to vector<4x1xf32>
    %148 = vector.extract_strided_slice %141 {offsets = [1, 0], sizes = [1, 17], strides = [1, 1]} : vector<4x17xf32> to vector<1x17xf32>
    %149 = vector.broadcast %147 : vector<4x1xf32> to vector<4x17xf32>
    %150 = vector.broadcast %148 : vector<1x17xf32> to vector<4x17xf32>
    %151 = arith.mulf %149, %150 : vector<4x17xf32>
    %152 = arith.addf %146, %151 : vector<4x17xf32>
    %153 = vector.extract_strided_slice %13 {offsets = [0, 2], sizes = [4, 1], strides = [1, 1]} : vector<4x4xf32> to vector<4x1xf32>
    %154 = vector.extract_strided_slice %141 {offsets = [2, 0], sizes = [1, 17], strides = [1, 1]} : vector<4x17xf32> to vector<1x17xf32>
    %155 = vector.broadcast %153 : vector<4x1xf32> to vector<4x17xf32>
    %156 = vector.broadcast %154 : vector<1x17xf32> to vector<4x17xf32>
    %157 = arith.mulf %155, %156 : vector<4x17xf32>
    %158 = arith.addf %152, %157 : vector<4x17xf32>
    %159 = vector.extract_strided_slice %13 {offsets = [0, 3], sizes = [4, 1], strides = [1, 1]} : vector<4x4xf32> to vector<4x1xf32>
    %160 = vector.extract_strided_slice %141 {offsets = [3, 0], sizes = [1, 17], strides = [1, 1]} : vector<4x17xf32> to vector<1x17xf32>
    %161 = vector.broadcast %159 : vector<4x1xf32> to vector<4x17xf32>
    %162 = vector.broadcast %160 : vector<1x17xf32> to vector<4x17xf32>
    %163 = arith.mulf %161, %162 : vector<4x17xf32>
    %164 = arith.addf %158, %163 : vector<4x17xf32>
    %165 = vector.extract_strided_slice %0 {offsets = [24, 0], sizes = [4, 4], strides = [1, 1]} : vector<32x17xf32> to vector<4x4xf32>
    %166 = vector.extract_strided_slice %0 {offsets = [16, 6], sizes = [4, 1], strides = [1, 1]} : vector<32x17xf32> to vector<4x1xf32>
    %167 = vector.extract_strided_slice %165 {offsets = [0, 0], sizes = [4, 1], strides = [1, 1]} : vector<4x4xf32> to vector<4x1xf32>
    %168 = vector.extract_strided_slice %164 {offsets = [0, 0], sizes = [1, 17], strides = [1, 1]} : vector<4x17xf32> to vector<1x17xf32>
    %169 = vector.broadcast %167 : vector<4x1xf32> to vector<4x17xf32>
    %170 = vector.broadcast %168 : vector<1x17xf32> to vector<4x17xf32>
    %171 = arith.mulf %169, %170 : vector<4x17xf32>
    %172 = vector.extract_strided_slice %165 {offsets = [0, 1], sizes = [4, 1], strides = [1, 1]} : vector<4x4xf32> to vector<4x1xf32>
    %173 = vector.extract_strided_slice %164 {offsets = [1, 0], sizes = [1, 17], strides = [1, 1]} : vector<4x17xf32> to vector<1x17xf32>
    %174 = vector.broadcast %172 : vector<4x1xf32> to vector<4x17xf32>
    %175 = vector.broadcast %173 : vector<1x17xf32> to vector<4x17xf32>
    %176 = arith.mulf %174, %175 : vector<4x17xf32>
    %177 = arith.addf %171, %176 : vector<4x17xf32>
    %178 = vector.extract_strided_slice %165 {offsets = [0, 2], sizes = [4, 1], strides = [1, 1]} : vector<4x4xf32> to vector<4x1xf32>
    %179 = vector.extract_strided_slice %164 {offsets = [2, 0], sizes = [1, 17], strides = [1, 1]} : vector<4x17xf32> to vector<1x17xf32>
    %180 = vector.broadcast %178 : vector<4x1xf32> to vector<4x17xf32>
    %181 = vector.broadcast %179 : vector<1x17xf32> to vector<4x17xf32>
    %182 = arith.mulf %180, %181 : vector<4x17xf32>
    %183 = arith.addf %177, %182 : vector<4x17xf32>
    %184 = vector.extract_strided_slice %165 {offsets = [0, 3], sizes = [4, 1], strides = [1, 1]} : vector<4x4xf32> to vector<4x1xf32>
    %185 = vector.extract_strided_slice %164 {offsets = [3, 0], sizes = [1, 17], strides = [1, 1]} : vector<4x17xf32> to vector<1x17xf32>
    %186 = vector.broadcast %184 : vector<4x1xf32> to vector<4x17xf32>
    %187 = vector.broadcast %185 : vector<1x17xf32> to vector<4x17xf32>
    %188 = arith.mulf %186, %187 : vector<4x17xf32>
    %189 = arith.addf %183, %188 : vector<4x17xf32>
    %190 = vector.broadcast %166 : vector<4x1xf32> to vector<4x17xf32>
    %191 = arith.addf %189, %190 : vector<4x17xf32>
    %cst_9 = arith.constant 0.000000e+00 : f32
    %192 = vector.broadcast %cst_9 : f32 to vector<4x17xf32>
    %193 = arith.maximumf %191, %192 : vector<4x17xf32>
    %194 = arith.addf %106, %193 : vector<4x17xf32>
    %195 = vector.extract_strided_slice %194 {offsets = [0, 0], sizes = [1, 17], strides = [1, 1]} : vector<4x17xf32> to vector<1x17xf32>
    %196 = vector.broadcast %195 : vector<1x17xf32> to vector<4x17xf32>
    %197 = arith.mulf %1, %196 : vector<4x17xf32>
    %198 = vector.extract_strided_slice %194 {offsets = [1, 0], sizes = [1, 17], strides = [1, 1]} : vector<4x17xf32> to vector<1x17xf32>
    %199 = vector.broadcast %198 : vector<1x17xf32> to vector<4x17xf32>
    %200 = arith.mulf %2, %199 : vector<4x17xf32>
    %201 = arith.addf %197, %200 : vector<4x17xf32>
    %202 = vector.extract_strided_slice %194 {offsets = [2, 0], sizes = [1, 17], strides = [1, 1]} : vector<4x17xf32> to vector<1x17xf32>
    %203 = vector.broadcast %202 : vector<1x17xf32> to vector<4x17xf32>
    %204 = arith.mulf %3, %203 : vector<4x17xf32>
    %205 = arith.addf %201, %204 : vector<4x17xf32>
    %206 = vector.extract_strided_slice %194 {offsets = [3, 0], sizes = [1, 17], strides = [1, 1]} : vector<4x17xf32> to vector<1x17xf32>
    %207 = vector.broadcast %206 : vector<1x17xf32> to vector<4x17xf32>
    %208 = arith.mulf %4, %207 : vector<4x17xf32>
    %209 = arith.addf %205, %208 : vector<4x17xf32>
    %210 = arith.mulf %194, %194 : vector<4x17xf32>
    %cst_10 = arith.constant dense<0.000000e+00> : vector<17xf32>
    %211 = vector.multi_reduction <add>, %210, %cst_10 [0] : vector<4x17xf32> to vector<17xf32>
    %212 = vector.shape_cast %211 : vector<17xf32> to vector<1x17xf32>
    %213 = math.sqrt %212 : vector<1x17xf32>
    %214 = vector.broadcast %213 : vector<1x17xf32> to vector<4x17xf32>
    %215 = arith.mulf %12, %214 : vector<4x17xf32>
    %cst_11 = arith.constant 9.99999993E-9 : f32
    %216 = vector.broadcast %cst_11 : f32 to vector<4x17xf32>
    %217 = arith.maximumf %215, %216 : vector<4x17xf32>
    %218 = tpu.reciprocal %217 : vector<4x17xf32> -> vector<4x17xf32>
    %219 = arith.mulf %209, %218 : vector<4x17xf32>
    %cst_12 = arith.constant dense<0xFF800000> : vector<17xf32>
    %220 = vector.multi_reduction <maximumf>, %219, %cst_12 [0] : vector<4x17xf32> to vector<17xf32>
    %221 = vector.shape_cast %220 : vector<17xf32> to vector<1x17xf32>
    %222 = vector.broadcast %221 : vector<1x17xf32> to vector<4x17xf32>
    %223 = arith.subf %219, %222 : vector<4x17xf32>
    %224 = math.exp %223 : vector<4x17xf32>
    %cst_13 = arith.constant dense<0.000000e+00> : vector<17xf32>
    %225 = vector.multi_reduction <add>, %224, %cst_13 [0] : vector<4x17xf32> to vector<17xf32>
    %226 = vector.shape_cast %225 : vector<17xf32> to vector<1x17xf32>
    %227 = tpu.reciprocal %226 : vector<1x17xf32> -> vector<1x17xf32>
    %228 = vector.broadcast %227 : vector<1x17xf32> to vector<4x17xf32>
    %229 = arith.mulf %224, %228 : vector<4x17xf32>
    %230 = vector.extract_strided_slice %13 {offsets = [0, 0], sizes = [4, 1], strides = [1, 1]} : vector<4x4xf32> to vector<4x1xf32>
    %231 = vector.extract_strided_slice %229 {offsets = [0, 0], sizes = [1, 17], strides = [1, 1]} : vector<4x17xf32> to vector<1x17xf32>
    %232 = vector.broadcast %230 : vector<4x1xf32> to vector<4x17xf32>
    %233 = vector.broadcast %231 : vector<1x17xf32> to vector<4x17xf32>
    %234 = arith.mulf %232, %233 : vector<4x17xf32>
    %235 = vector.extract_strided_slice %13 {offsets = [0, 1], sizes = [4, 1], strides = [1, 1]} : vector<4x4xf32> to vector<4x1xf32>
    %236 = vector.extract_strided_slice %229 {offsets = [1, 0], sizes = [1, 17], strides = [1, 1]} : vector<4x17xf32> to vector<1x17xf32>
    %237 = vector.broadcast %235 : vector<4x1xf32> to vector<4x17xf32>
    %238 = vector.broadcast %236 : vector<1x17xf32> to vector<4x17xf32>
    %239 = arith.mulf %237, %238 : vector<4x17xf32>
    %240 = arith.addf %234, %239 : vector<4x17xf32>
    %241 = vector.extract_strided_slice %13 {offsets = [0, 2], sizes = [4, 1], strides = [1, 1]} : vector<4x4xf32> to vector<4x1xf32>
    %242 = vector.extract_strided_slice %229 {offsets = [2, 0], sizes = [1, 17], strides = [1, 1]} : vector<4x17xf32> to vector<1x17xf32>
    %243 = vector.broadcast %241 : vector<4x1xf32> to vector<4x17xf32>
    %244 = vector.broadcast %242 : vector<1x17xf32> to vector<4x17xf32>
    %245 = arith.mulf %243, %244 : vector<4x17xf32>
    %246 = arith.addf %240, %245 : vector<4x17xf32>
    %247 = vector.extract_strided_slice %13 {offsets = [0, 3], sizes = [4, 1], strides = [1, 1]} : vector<4x4xf32> to vector<4x1xf32>
    %248 = vector.extract_strided_slice %229 {offsets = [3, 0], sizes = [1, 17], strides = [1, 1]} : vector<4x17xf32> to vector<1x17xf32>
    %249 = vector.broadcast %247 : vector<4x1xf32> to vector<4x17xf32>
    %250 = vector.broadcast %248 : vector<1x17xf32> to vector<4x17xf32>
    %251 = arith.mulf %249, %250 : vector<4x17xf32>
    %252 = arith.addf %246, %251 : vector<4x17xf32>
    %253 = vector.extract_strided_slice %0 {offsets = [28, 0], sizes = [4, 4], strides = [1, 1]} : vector<32x17xf32> to vector<4x4xf32>
    %254 = vector.extract_strided_slice %0 {offsets = [16, 7], sizes = [4, 1], strides = [1, 1]} : vector<32x17xf32> to vector<4x1xf32>
    %255 = vector.extract_strided_slice %253 {offsets = [0, 0], sizes = [4, 1], strides = [1, 1]} : vector<4x4xf32> to vector<4x1xf32>
    %256 = vector.extract_strided_slice %252 {offsets = [0, 0], sizes = [1, 17], strides = [1, 1]} : vector<4x17xf32> to vector<1x17xf32>
    %257 = vector.broadcast %255 : vector<4x1xf32> to vector<4x17xf32>
    %258 = vector.broadcast %256 : vector<1x17xf32> to vector<4x17xf32>
    %259 = arith.mulf %257, %258 : vector<4x17xf32>
    %260 = vector.extract_strided_slice %253 {offsets = [0, 1], sizes = [4, 1], strides = [1, 1]} : vector<4x4xf32> to vector<4x1xf32>
    %261 = vector.extract_strided_slice %252 {offsets = [1, 0], sizes = [1, 17], strides = [1, 1]} : vector<4x17xf32> to vector<1x17xf32>
    %262 = vector.broadcast %260 : vector<4x1xf32> to vector<4x17xf32>
    %263 = vector.broadcast %261 : vector<1x17xf32> to vector<4x17xf32>
    %264 = arith.mulf %262, %263 : vector<4x17xf32>
    %265 = arith.addf %259, %264 : vector<4x17xf32>
    %266 = vector.extract_strided_slice %253 {offsets = [0, 2], sizes = [4, 1], strides = [1, 1]} : vector<4x4xf32> to vector<4x1xf32>
    %267 = vector.extract_strided_slice %252 {offsets = [2, 0], sizes = [1, 17], strides = [1, 1]} : vector<4x17xf32> to vector<1x17xf32>
    %268 = vector.broadcast %266 : vector<4x1xf32> to vector<4x17xf32>
    %269 = vector.broadcast %267 : vector<1x17xf32> to vector<4x17xf32>
    %270 = arith.mulf %268, %269 : vector<4x17xf32>
    %271 = arith.addf %265, %270 : vector<4x17xf32>
    %272 = vector.extract_strided_slice %253 {offsets = [0, 3], sizes = [4, 1], strides = [1, 1]} : vector<4x4xf32> to vector<4x1xf32>
    %273 = vector.extract_strided_slice %252 {offsets = [3, 0], sizes = [1, 17], strides = [1, 1]} : vector<4x17xf32> to vector<1x17xf32>
    %274 = vector.broadcast %272 : vector<4x1xf32> to vector<4x17xf32>
    %275 = vector.broadcast %273 : vector<1x17xf32> to vector<4x17xf32>
    %276 = arith.mulf %274, %275 : vector<4x17xf32>
    %277 = arith.addf %271, %276 : vector<4x17xf32>
    %278 = vector.broadcast %254 : vector<4x1xf32> to vector<4x17xf32>
    %279 = arith.addf %277, %278 : vector<4x17xf32>
    %cst_14 = arith.constant 0.000000e+00 : f32
    %280 = vector.broadcast %cst_14 : f32 to vector<4x17xf32>
    %281 = arith.maximumf %279, %280 : vector<4x17xf32>
    %282 = arith.addf %194, %281 : vector<4x17xf32>
    %283 = vector.broadcast %15 : vector<4x1xf32> to vector<4x17xf32>
    %284 = arith.mulf %282, %283 : vector<4x17xf32>
    %cst_15 = arith.constant dense<0.000000e+00> : vector<17xf32>
    %285 = vector.multi_reduction <add>, %284, %cst_15 [0] : vector<4x17xf32> to vector<17xf32>
    %286 = vector.shape_cast %285 : vector<17xf32> to vector<1x17xf32>
    %287 = vector.broadcast %16 : vector<1x1xf32> to vector<1x17xf32>
    %288 = arith.addf %286, %287 : vector<1x17xf32>
    %c0_16 = arith.constant 0 : index
    %c0_17 = arith.constant 0 : index
    %289 = vector.load %arg1[%c0_16, %c0_17] : memref<1x17xf32, #tpu.memory_space<vmem>>, vector<1x17xf32>
    tpu.vector_store %arg1[%c0_16, %c0_17], %288 {strides = array<i32>} : memref<1x17xf32, #tpu.memory_space<vmem>>, vector<1x17xf32>,
    return
  }
}

</mosaic_0001>

<bundles_post_ra>
// kernel: tpu_custom_call.1
= control target key start
LH: loop header
LB: loop body
LE: loop exit
PB: predicated region body
PF: predicated region fallthrough
CT: control target
= control target key end

     0   :  { %s562_s8 = smov 124   ;;  %v563_v3 = vmov 0   ;;  %s752_s0 = inlined_call_operand.vmem [shape: f32[32,17], index: 0, kind: input, shape index: {}]   ;;  %s753_s1 = inlined_call_operand.hbm [shape: f32[1,17], index: 1, kind: output, shape index: {}]  }
   0x1   :  { %v587_v0 = vld [vmem:[%s752_s0 + $0x10] sm:$0xff]  ;;  %500 = vset.pattern.permute.xlu1 %v563_v3 }
   0x2   :  { %36 = vrot.lane.b32.xlu0 %v587_v0, %s562_s8  ;;  %v53_v1 = vrot.slane %v587_v0, 2  ;;  %v42_v2 = vrot.slane %v587_v0, 1 }
   0x3   :  { %6 = vsyncpa [#allocation3], 0  ;;  %v564_v4 = vmov 4   ;;  %v61_v5 = vrot.slane %v587_v0, 3  ;;  %v565_v6 = vmov 2   ;;  %v566_v7 = vmov 1  }
   0x4   :  { %499 = vset.pattern.permute.xlu0 %v564_v4  ;;  %54 = vrot.lane.b32.xlu1 %v53_v1, %s562_s8  ;;  %v567_v8 = vmov 3   ;;  %v568_v9 = vmov 5   ;;  %v602_v12 = vld [vmem:[%s752_s0] sm:$0xff]  ;;  %v609_v17 = vld [vmem:[%s752_s0 + $0x8] sm:$0xff]  ;;  %vm73_vm0 = vcmask 1043456   ;;  %v12_v30 = vld [vmem:[%s752_s0 + $0x18] sm:$0xff] }
   0x5   :  { %v13_v14 = vmul.f32 %v602_v12, %v602_v12  ;;  %v18_v19 = vmul.f32 %v609_v17, %v609_v17  ;;  %v569_v34 = vmov 6   ;;  %vm92_vm5 = vcmask 134144   ;;  %s573_s18 = smov [#allocation2]  }
   0x6   :  { %43 = vrot.lane.b32.xlu0 %v42_v2, %s562_s8  ;;  %s471_s19 = sshll.u32 %s573_s18, 4  ;;  %vm463_vm10 = vcmask 131072   ;;  %s472_s19 = int_to_ptr.vmem [resolvable:$true] %s471_s19 }
   0x7   :  { %v15_v16 = vrot.slane %v13_v14, 4  ;;  %v21_v22 = vrot.slane %v18_v19, 4  ;;  %s540_s20 = scalar_lea.vmem %s472_s19, 16  ;;  %s544_s21 = scalar_lea.vmem %s472_s19, 32 }
   0x8   :  { %62 = vrot.lane.b32.xlu1 %v61_v5, %s562_s8  ;;  %p541_p0 = scmp.ne.s32.totalorder %s472_s19, %s540_s20  ;;  %p545_p1 = scmp.lt.s32.totalorder %s472_s19, %s472_s19 }
   0x9   :  { %v17_v18 = vadd.f32 %v15_v16, %v13_v14  ;;  %v116_v16 = vlaneseq  ;;  %p546_p2 = scmp.lt.s32.totalorder %s544_s21, %s540_s20 }
   0xa   :  { %33 = vperm.xlu0 %499, %v587_v0  }
   0xb   :  { %v19_v21 = vadd.f32 %v18_v19, %v17_v18  ;;  %v117_v19 = vshrl.u32 %v116_v16, 7  ;;  %p547_p3 = por %p546_p2, %p545_p1 }
   0xc   :  { %113 = vperm.xlu1 %500, %v587_v0  }
   0xd   :  { %v23_v26 = vadd.f32 %v21_v22, %v19_v21  ;;  %v632_v21 = vsub.s32 0, %v117_v19  ;;  %v634_v22 = vsub.s32 1, %v117_v19  ;;  %p548_p4 = pnand %p547_p3, %p541_p0 }
   0xe   :  { %502 = vset.pattern.permute.xlu0 %v565_v6 }
   0xf   :  { %132 = vperm.xlu0 %502, %v587_v0   ;;  %514 = vrsqrt.f32 %v23_v26  ;;  %vm26_vm1 = vcmp.eq.f32.partialorder %v23_v26, inf  ;;  %v29_v36 = vand.u32 2147483648, %v23_v26  ;;  %vm28_vm2 = vcmp.eq.f32.partialorder %v23_v26, 0.0 }
  0x10   :  { %501 = vset.pattern.permute.xlu1 %v566_v7 }
  0x11   :  { %122 = vperm.xlu1 %501, %v587_v0  }
  0x13   :  { %505 = vset.pattern.permute.xlu0 %v563_v3 }
  0x14   :  { %277 = vperm.xlu0 %505, %v12_v30  }
  0x15   :  { %503 = vset.pattern.permute.xlu1 %v567_v8 }
  0x16   :  { %142 = vperm.xlu1 %503, %v587_v0  }
  0x18   :  { %508 = vset.pattern.permute.xlu0 %v567_v8 }
  0x19   :  { %306 = vperm.xlu0 %508, %v12_v30  }
  0x1a   :  { %504 = vset.pattern.permute.xlu1 %v568_v9 }
  0x1b   :  { %175 = vperm.xlu1 %504, %v587_v0  }
  0x1c   :  { %v515_v33 = vpop.eup %514 }
  0x1d   :  { %v25_v35 = vmul.f32 %v515_v33, %v23_v26 }
  0x1f   :  { %506 = vset.pattern.permute.xlu1 %v566_v7  ;;  %v27_v37 = vsel %vm26_vm1, %v23_v26, %v25_v35 }
  0x20   :  { %286 = vperm.xlu1 %506, %v12_v30   ;;  %v621_v40 = vsel %vm28_vm2, %v29_v36, %v27_v37 }
  0x24   :  { %507 = vset.pattern.permute.xlu1 %v565_v6 }
  0x25   :  { %296 = vperm.xlu1 %507, %v12_v30  }
  0x29   :  { %509 = vset.pattern.permute.xlu1 %v569_v34 }
  0x2a   :  { %316 = vperm.xlu1 %509, %v587_v0  }
  0x74   :  { %v37_v10 = vpop.permute.xlu0 %36 }
  0x75   :  { %479 = vpush %v37_v10 }
  0x76   :  { %v55_v11 = vpop.permute.xlu1 %54 }
  0x78   :  { %v44_v13 = vpop.permute.xlu0 %43 }
  0x79   :  { %481 = vpush %v44_v13 }
  0x7a   :  { %v63_v15 = vpop.permute.xlu1 %62  ;;  %483 = vpush %v55_v11 }
  0x7b   :  { %485 = vpush %v63_v15 }
  0x85   :  { %v613_v20 = vpop.permute.xlu0 %33 }
  0x86   :  { %v72_v23 = vmul.f32 %v613_v20, %v613_v20 }
  0x87   :  { %v630_v18 = vpop.permute.xlu1 %113 }
  0x88   :  { %v74_v24 = vsel %vm73_vm0, %v72_v23, 0.0  ;;  %v636_v23 = vsub.s32 2, %v117_v19 }
  0x89   :  { %v75_v25 = vrot.slane %v74_v24, 4 }
  0x8b   :  { %v76_v27 = vadd.f32 %v75_v25, %v74_v24 }
  0x8c   :  { %v638_v25 = vpop.permute.xlu1 %122 }
  0x8d   :  { %v77_v28 = vrot.slane %v76_v27, 2 }
  0x8f   :  { %v78_v29 = vadd.f32 %v77_v28, %v76_v27  ;;  %v640_v27 = vsub.s32 3, %v117_v19 }
  0x91   :  { %v79_v31 = vrot.slane %v78_v29, 1  ;;  %v650_v35 = vpop.permute.xlu1 %142 }
  0x93   :  { %v80_v32 = vadd.f32 %v79_v31, %v78_v29  ;;  %v645_v31 = vpop.permute.xlu0 %132 }
  0x95   :  { %516 = vrsqrt.f32 %v80_v32  ;;  %vm83_vm3 = vcmp.eq.f32.partialorder %v80_v32, inf  ;;  %v86_v41 = vand.u32 2147483648, %v80_v32  ;;  %vm85_vm4 = vcmp.eq.f32.partialorder %v80_v32, 0.0 }
  0xa2   :  { %v517_v38 = vpop.eup %516 }
  0xa3   :  { %v82_v39 = vmul.f32 %v517_v38, %v80_v32 }
  0xa5   :  { %v84_v42 = vsel %vm83_vm3, %v80_v32, %v82_v39 }
  0xa6   :  { %v87_v43 = vsel %vm85_vm4, %v86_v41, %v84_v42  ;;  %s480_s0 = spop %479 }
  0xa7   :  { %v88_v44 = vmul.f32 %v87_v43, %v621_v40  ;;  %v39_v46 = vstv %s480_s0 }
  0xa8   :  { %v41_v51 = vmul.f32 %v39_v46, %v602_v12 }
  0xa9   :  { %v89_v45 = vmax.f32 %v88_v44, 1e-08 }
  0xaa   :  { %s482_s15 = spop %481 }
  0xab   :  { %v46_v47 = vstv %s482_s15  ;;  %s484_s16 = spop %483  ;;  %518 = vrcp.f32 %v89_v45 }
  0xac   :  { %v48_v48 = vmul.f32 %v46_v47, %v602_v12  ;;  %v57_v49 = vstv %s484_s16  ;;  %s486_s17 = spop %485 }
  0xad   :  { %v65_v50 = vstv %s486_s17  ;;  %v59_v53 = vmul.f32 %v57_v49, %v609_v17 }
  0xae   :  { %v50_v52 = vrot.slane %v48_v48, 4  ;;  %v67_v54 = vmul.f32 %v65_v50, %v609_v17  ;;  %v176_v48 = vpop.permute.xlu1 %175 }
  0xb0   :  { %v52_v55 = vadd.f32 %v50_v52, %v41_v51  ;;  %v69_v57 = vrot.slane %v67_v54, 4 }
  0xb2   :  { %v60_v56 = vadd.f32 %v59_v53, %v52_v55  ;;  %v177_v53 = vrot.slane %v176_v48, 4 }
  0xb4   :  { %v71_v58 = vadd.f32 %v69_v57, %v60_v56 }
  0xb8   :  { %v519_v59 = vpop.eup %518 }
  0xb9   :  { %v91_v60 = vmul.f32 %v519_v59, %v71_v58 }
  0xbb   :  { %v93_v61 = vsel %vm92_vm5, %v91_v60, -inf }
  0xbc   :  { %v94_v62 = vrot.slane %v93_v61, 4 }
  0xbe   :  { %v95_v63 = vmax.f32 %v93_v61, %v94_v62 }
  0xc0   :  { %v96_v1 = vrot.slane %v95_v63, 2 }
  0xc2   :  { %v97_v2 = vmax.f32 %v95_v63, %v96_v1 }
  0xc4   :  { %v98_v3 = vrot.slane %v97_v2, 1 }
  0xc6   :  { %v99_v4 = vmax.f32 %v97_v2, %v98_v3 }
  0xc8   :  { %v100_v5 = vsub.f32 %v91_v60, %v99_v4  ;;  %v570_v4 = vmov 7  }
  0xc9   :  { %510 = vset.pattern.permute.xlu1 %v570_v4  ;;  %v693_v4 = vpop.permute.xlu1 %286 }
  0xca   :  { %v101_v6 = vmul.f32 1.442695, %v100_v5  ;;  %436 = vperm.xlu1 %510, %v587_v0  }
  0xcc   :  { %520 = vpow2.f32 %v101_v6  ;;  %v571_v6 = vmov 8  }
  0xcd   :  { %511 = vset.pattern.permute.xlu0 %v571_v6 }
  0xce   :  { %447 = vperm.xlu0 %511, %v587_v0  }
  0xd9   :  { %v521_v7 = vpop.eup %520 }
  0xda   :  { %v103_v8 = vsel %vm92_vm5, %v521_v7, 0.0 }
  0xdb   :  { %v104_v9 = vrot.slane %v103_v8, 4 }
  0xdd   :  { %v105_v10 = vadd.f32 %v104_v9, %v103_v8 }
  0xdf   :  { %v106_v11 = vrot.slane %v105_v10, 2 }
  0xe1   :  { %v107_v13 = vadd.f32 %v106_v11, %v105_v10 }
  0xe3   :  { %v108_v14 = vrot.slane %v107_v13, 1 }
  0xe5   :  { %v109_v15 = vadd.f32 %v108_v14, %v107_v13 }
  0xe7   :  { %522 = vrcp.f32 %v109_v15 }
  0xf4   :  { %v523_v24 = vpop.eup %522 }
  0xf5   :  { %v111_v26 = vmul.f32 %v523_v24, %v521_v7 }
  0xf7   :  { %v119_v28 = vrot.slane %v111_v26, %v632_v21  ;;  %v128_v29 = vrot.slane %v111_v26, %v634_v22  ;;  %v138_v30 = vrot.slane %v111_v26, %v636_v23  ;;  %v148_v34 = vrot.slane %v111_v26, %v640_v27 }
  0xf9   :  { %v120_v32 = vmul.f32 %v119_v28, %v630_v18  ;;  %v129_v33 = vmul.f32 %v128_v29, %v638_v25  ;;  %v139_v37 = vmul.f32 %v138_v30, %v645_v31  ;;  %v149_v38 = vmul.f32 %v148_v34, %v650_v35 }
  0xfb   :  { %v130_v36 = vadd.f32 %v129_v33, %v120_v32  ;;  %v572_v32 = vmov 9  }
  0xfc   :  { %512 = vset.pattern.permute.xlu1 %v572_v32  ;;  %513 = vset.pattern.permute.xlu0 %v572_v32 }
  0xfd   :  { %v140_v39 = vadd.f32 %v139_v37, %v130_v36  ;;  %459 = vperm.xlu1 %512, %v587_v0  }
  0xff   :  { %v150_v41 = vadd.f32 %v149_v38, %v140_v39 }
 0x101   :  { %v165_v42 = vrot.slane %v150_v41, %v636_v23  ;;  %v154_v43 = vrot.slane %v150_v41, %v632_v21  ;;  %v159_v44 = vrot.slane %v150_v41, %v634_v22  ;;  %v171_v47 = vrot.slane %v150_v41, %v640_v27 }
 0x103   :  { %v155_v45 = vmul.f32 %v154_v43, %v630_v18  ;;  %v160_v46 = vmul.f32 %v159_v44, %v638_v25  ;;  %v166_v49 = vmul.f32 %v165_v42, %v645_v31  ;;  %v172_v52 = vmul.f32 %v171_v47, %v650_v35 }
 0x105   :  { %v161_v50 = vadd.f32 %v160_v46, %v155_v45 }
 0x107   :  { %v167_v51 = vadd.f32 %v166_v49, %v161_v50 }
 0x109   :  { %v173_v54 = vadd.f32 %v172_v52, %v167_v51 }
 0x10b   :  { %v179_v55 = vadd.f32 %v177_v53, %v173_v54 }
 0x10d   :  { %v180_v56 = vmax.f32 %v179_v55, 0.0 }
 0x10f   :  { %v182_v57 = vrot.slane %v180_v56, 4 }
 0x111   :  { %v663_v58 = vadd.f32 %v182_v57, %v613_v20 }
 0x113   :  { %v214_v59 = vmul.f32 %v663_v58, %v663_v58  ;;  %v193_v20 = vrot.slane %v663_v58, %v634_v22  ;;  %v188_v14 = vrot.slane %v663_v58, %v632_v21  ;;  %v202_v24 = vrot.slane %v663_v58, %v636_v23 }
 0x114   :  { %v208_v26 = vrot.slane %v663_v58, %v640_v27 }
 0x115   :  { %v215_v60 = vsel %vm92_vm5, %v214_v59, 0.0  ;;  %v194_v11 = vmul.f32 %v193_v20, %v602_v12  ;;  %v189_v19 = vmul.f32 %v188_v14, %v602_v12  ;;  %v203_v29 = vmul.f32 %v202_v24, %v609_v17  ;;  %v696_v20 = vpop.permute.xlu0 %277 }
 0x116   :  { %v216_v61 = vrot.slane %v215_v60, 4  ;;  %v209_v30 = vmul.f32 %v208_v26, %v609_v17 }
 0x117   :  { %v196_v16 = vrot.slane %v194_v11, 4  ;;  %v701_v11 = vpop.permute.xlu1 %296 }
 0x118   :  { %v217_v62 = vadd.f32 %v216_v61, %v215_v60  ;;  %v211_v34 = vrot.slane %v209_v30, 4 }
 0x119   :  { %v198_v28 = vadd.f32 %v196_v16, %v189_v19  ;;  %v706_v16 = vpop.permute.xlu0 %306 }
 0x11a   :  { %v218_v63 = vrot.slane %v217_v62, 2 }
 0x11b   :  { %v204_v33 = vadd.f32 %v203_v29, %v198_v28  ;;  %v317_v29 = vpop.permute.xlu1 %316 }
 0x11c   :  { %v219_v1 = vadd.f32 %v218_v63, %v217_v62 }
 0x11d   :  { %v213_v36 = vadd.f32 %v211_v34, %v204_v33 }
 0x11e   :  { %v220_v2 = vrot.slane %v219_v1, 1 }
 0x120   :  { %v221_v3 = vadd.f32 %v220_v2, %v219_v1 }
 0x122   :  { %524 = vrsqrt.f32 %v221_v3  ;;  %vm224_vm6 = vcmp.eq.f32.partialorder %v221_v3, inf  ;;  %v227_v8 = vand.u32 2147483648, %v221_v3  ;;  %vm226_vm7 = vcmp.eq.f32.partialorder %v221_v3, 0.0 }
 0x12f   :  { %v525_v5 = vpop.eup %524 }
 0x130   :  { %v223_v7 = vmul.f32 %v525_v5, %v221_v3 }
 0x132   :  { %v225_v9 = vsel %vm224_vm6, %v221_v3, %v223_v7 }
 0x133   :  { %v228_v10 = vsel %vm226_vm7, %v227_v8, %v225_v9 }
 0x134   :  { %v229_v13 = vmul.f32 %v228_v10, %v621_v40 }
 0x136   :  { %v230_v15 = vmax.f32 %v229_v13, 1e-08 }
 0x138   :  { %526 = vrcp.f32 %v230_v15 }
 0x145   :  { %v527_v37 = vpop.eup %526 }
 0x146   :  { %v232_v38 = vmul.f32 %v527_v37, %v213_v36 }
 0x148   :  { %v233_v39 = vsel %vm92_vm5, %v232_v38, -inf }
 0x149   :  { %v234_v41 = vrot.slane %v233_v39, 4 }
 0x14b   :  { %v235_v42 = vmax.f32 %v233_v39, %v234_v41 }
 0x14d   :  { %v236_v43 = vrot.slane %v235_v42, 2 }
 0x14f   :  { %v237_v44 = vmax.f32 %v235_v42, %v236_v43 }
 0x151   :  { %v238_v45 = vrot.slane %v237_v44, 1 }
 0x153   :  { %v239_v46 = vmax.f32 %v237_v44, %v238_v45 }
 0x155   :  { %v240_v47 = vsub.f32 %v232_v38, %v239_v46 }
 0x157   :  { %v241_v48 = vmul.f32 1.442695, %v240_v47 }
 0x159   :  { %528 = vpow2.f32 %v241_v48 }
 0x166   :  { %v529_v49 = vpop.eup %528 }
 0x167   :  { %v243_v50 = vsel %vm92_vm5, %v529_v49, 0.0 }
 0x168   :  { %v244_v0 = vrot.slane %v243_v50, 4 }
 0x16a   :  { %v245_v51 = vadd.f32 %v244_v0, %v243_v50 }
 0x16c   :  { %v246_v52 = vrot.slane %v245_v51, 2 }
 0x16e   :  { %v247_v53 = vadd.f32 %v246_v52, %v245_v51 }
 0x170   :  { %v248_v54 = vrot.slane %v247_v53, 1 }
 0x172   :  { %v249_v55 = vadd.f32 %v248_v54, %v247_v53 }
 0x174   :  { %530 = vrcp.f32 %v249_v55 }
 0x181   :  { %v531_v56 = vpop.eup %530 }
 0x182   :  { %v251_v57 = vmul.f32 %v531_v56, %v529_v49 }
 0x184   :  { %v255_v59 = vrot.slane %v251_v57, %v632_v21  ;;  %v260_v60 = vrot.slane %v251_v57, %v634_v22  ;;  %v266_v61 = vrot.slane %v251_v57, %v636_v23  ;;  %v272_v1 = vrot.slane %v251_v57, %v640_v27 }
 0x186   :  { %v256_v62 = vmul.f32 %v255_v59, %v630_v18  ;;  %v261_v63 = vmul.f32 %v260_v60, %v638_v25  ;;  %v267_v3 = vmul.f32 %v266_v61, %v645_v31  ;;  %v273_v6 = vmul.f32 %v272_v1, %v650_v35 }
 0x188   :  { %v262_v2 = vadd.f32 %v261_v63, %v256_v62 }
 0x18a   :  { %v268_v5 = vadd.f32 %v267_v3, %v262_v2 }
 0x18c   :  { %v274_v7 = vadd.f32 %v273_v6, %v268_v5 }
 0x18e   :  { %v292_v8 = vrot.slane %v274_v7, %v634_v22  ;;  %v283_v9 = vrot.slane %v274_v7, %v632_v21  ;;  %v302_v10 = vrot.slane %v274_v7, %v636_v23  ;;  %v312_v15 = vrot.slane %v274_v7, %v640_v27 }
 0x190   :  { %v293_v13 = vmul.f32 %v292_v8, %v693_v4  ;;  %v284_v14 = vmul.f32 %v283_v9, %v696_v20  ;;  %v303_v24 = vmul.f32 %v302_v10, %v701_v11  ;;  %v313_v28 = vmul.f32 %v312_v15, %v706_v16 }
 0x192   :  { %v294_v19 = vadd.f32 %v293_v13, %v284_v14 }
 0x194   :  { %v304_v26 = vadd.f32 %v303_v24, %v294_v19 }
 0x196   :  { %v314_v30 = vadd.f32 %v313_v28, %v304_v26 }
 0x198   :  { %v319_v32 = vadd.f32 %v317_v29, %v314_v30 }
 0x19a   :  { %v320_v33 = vmax.f32 %v319_v32, 0.0 }
 0x19c   :  { %v711_v34 = vadd.f32 %v320_v33, %v663_v58 }
 0x19e   :  { %v351_v36 = vmul.f32 %v711_v34, %v711_v34  ;;  %v330_v46 = vrot.slane %v711_v34, %v634_v22  ;;  %v325_v51 = vrot.slane %v711_v34, %v632_v21  ;;  %v339_v55 = vrot.slane %v711_v34, %v636_v23 }
 0x19f   :  { %v345_v56 = vrot.slane %v711_v34, %v640_v27 }
 0x1a0   :  { %v352_v37 = vsel %vm92_vm5, %v351_v36, 0.0  ;;  %v331_v50 = vmul.f32 %v330_v46, %v602_v12  ;;  %v326_v54 = vmul.f32 %v325_v51, %v602_v12  ;;  %v340_v59 = vmul.f32 %v339_v55, %v609_v17 }
 0x1a1   :  { %v353_v38 = vrot.slane %v352_v37, 4  ;;  %v346_v60 = vmul.f32 %v345_v56, %v609_v17 }
 0x1a2   :  { %v333_v53 = vrot.slane %v331_v50, 4 }
 0x1a3   :  { %v354_v39 = vadd.f32 %v353_v38, %v352_v37  ;;  %v348_v61 = vrot.slane %v346_v60, 4 }
 0x1a4   :  { %v335_v57 = vadd.f32 %v333_v53, %v326_v54  ;;  %v448_v54 = vpop.permute.xlu0 %447 }
 0x1a5   :  { %v355_v41 = vrot.slane %v354_v39, 2 }
 0x1a7   :  { %v356_v42 = vadd.f32 %v355_v41, %v354_v39 }
 0x1a9   :  { %v357_v43 = vrot.slane %v356_v42, 1 }
 0x1ab   :  { %v358_v44 = vadd.f32 %v357_v43, %v356_v42 }
 0x1ad   :  { %532 = vrsqrt.f32 %v358_v44  ;;  %vm361_vm8 = vcmp.eq.f32.partialorder %v358_v44, inf  ;;  %v364_v58 = vand.u32 2147483648, %v358_v44  ;;  %vm363_vm9 = vcmp.eq.f32.partialorder %v358_v44, 0.0 }
 0x1ba   :  { %v533_v45 = vpop.eup %532 }
 0x1bb   :  { %v360_v47 = vmul.f32 %v533_v45, %v358_v44 }
 0x1bd   :  { %v362_v48 = vsel %vm361_vm8, %v358_v44, %v360_v47 }
 0x1be   :  { %v365_v49 = vsel %vm363_vm9, %v364_v58, %v362_v48 }
 0x1bf   :  { %v366_v0 = vmul.f32 %v365_v49, %v621_v40  ;;  %v341_v40 = vadd.f32 %v340_v59, %v335_v57  ;;  %v437_v49 = vpop.permute.xlu1 %436 }
 0x1c0   :  { %v438_v51 = vrot.slane %v437_v49, 4 }
 0x1c1   :  { %v367_v52 = vmax.f32 %v366_v0, 1e-08  ;;  %v350_v62 = vadd.f32 %v348_v61, %v341_v40 }
 0x1c3   :  { %534 = vrcp.f32 %v367_v52 }
 0x1d0   :  { %v535_v63 = vpop.eup %534 }
 0x1d1   :  { %v369_v1 = vmul.f32 %v535_v63, %v350_v62 }
 0x1d3   :  { %v370_v2 = vsel %vm92_vm5, %v369_v1, -inf }
 0x1d4   :  { %v371_v3 = vrot.slane %v370_v2, 4 }
 0x1d6   :  { %v372_v12 = vmax.f32 %v370_v2, %v371_v3 }
 0x1d8   :  { %v373_v5 = vrot.slane %v372_v12, 2 }
 0x1da   :  { %v374_v6 = vmax.f32 %v372_v12, %v373_v5 }
 0x1dc   :  { %v375_v7 = vrot.slane %v374_v6, 1 }
 0x1de   :  { %v376_v8 = vmax.f32 %v374_v6, %v375_v7 }
 0x1e0   :  { %v377_v9 = vsub.f32 %v369_v1, %v376_v8 }
 0x1e2   :  { %v378_v10 = vmul.f32 1.442695, %v377_v9 }
 0x1e4   :  { %536 = vpow2.f32 %v378_v10 }
 0x1f1   :  { %v537_v13 = vpop.eup %536 }
 0x1f2   :  { %v380_v14 = vsel %vm92_vm5, %v537_v13, 0.0 }
 0x1f3   :  { %v381_v17 = vrot.slane %v380_v14, 4 }
 0x1f5   :  { %v382_v15 = vadd.f32 %v381_v17, %v380_v14 }
 0x1f7   :  { %v383_v19 = vrot.slane %v382_v15, 2 }
 0x1f9   :  { %v384_v24 = vadd.f32 %v383_v19, %v382_v15 }
 0x1fb   :  { %v385_v26 = vrot.slane %v384_v24, 1 }
 0x1fd   :  { %v386_v28 = vadd.f32 %v385_v26, %v384_v24 }
 0x1ff   :  { %538 = vrcp.f32 %v386_v28 }
 0x20c   :  { %v539_v29 = vpop.eup %538 }
 0x20d   :  { %v388_v30 = vmul.f32 %v539_v29, %v537_v13 }
 0x20f   :  { %v392_v32 = vrot.slane %v388_v30, %v632_v21  ;;  %v397_v33 = vrot.slane %v388_v30, %v634_v22  ;;  %v403_v36 = vrot.slane %v388_v30, %v636_v23  ;;  %v409_v39 = vrot.slane %v388_v30, %v640_v27 }
 0x211   :  { %v393_v37 = vmul.f32 %v392_v32, %v630_v18  ;;  %v398_v38 = vmul.f32 %v397_v33, %v638_v25  ;;  %v404_v42 = vmul.f32 %v403_v36, %v645_v31  ;;  %v410_v44 = vmul.f32 %v409_v39, %v650_v35 }
 0x213   :  { %v399_v41 = vadd.f32 %v398_v38, %v393_v37 }
 0x215   :  { %v405_v43 = vadd.f32 %v404_v42, %v399_v41 }
 0x217   :  { %v411_v45 = vadd.f32 %v410_v44, %v405_v43 }
 0x219   :  { %v415_v46 = vrot.slane %v411_v45, %v632_v21  ;;  %v420_v47 = vrot.slane %v411_v45, %v634_v22  ;;  %v426_v58 = vrot.slane %v411_v45, %v636_v23  ;;  %v432_v25 = vrot.slane %v411_v45, %v640_v27 }
 0x21b   :  { %v416_v48 = vmul.f32 %v415_v46, %v696_v20  ;;  %v421_v18 = vmul.f32 %v420_v47, %v693_v4  ;;  %v427_v31 = vmul.f32 %v426_v58, %v701_v11  ;;  %v433_v35 = vmul.f32 %v432_v25, %v706_v16  ;;  %v460_v11 = vpop.permute.xlu1 %459 }
 0x21d   :  { %v422_v50 = vadd.f32 %v421_v18, %v416_v48 }
 0x21f   :  { %v428_v0 = vadd.f32 %v427_v31, %v422_v50 }
 0x221   :  { %v434_v52 = vadd.f32 %v433_v35, %v428_v0 }
 0x223   :  { %v440_v21 = vadd.f32 %v438_v51, %v434_v52 }
 0x225   :  { %v441_v53 = vmax.f32 %v440_v21, 0.0 }
 0x227   :  { %v443_v22 = vrot.slane %v441_v53, 4 }
 0x229   :  { %v445_v23 = vadd.f32 %v443_v22, %v711_v34 }
 0x22b   :  { %v450_v20 = vmul.f32 %v448_v54, %v445_v23 }
 0x22d   :  { %v451_v4 = vsel %vm92_vm5, %v450_v20, 0.0 }
 0x22e   :  { %v452_v55 = vrot.slane %v451_v4, 4 }
 0x230   :  { %v453_v27 = vadd.f32 %v452_v55, %v451_v4 }
 0x232   :  { %v454_v56 = vrot.slane %v453_v27, 2 }
 0x234   :  { %v455_v57 = vadd.f32 %v454_v56, %v453_v27 }
 0x236   :  { %v456_v59 = vrot.slane %v455_v57, 1 }
 0x238   :  { %v457_v16 = vadd.f32 %v456_v59, %v455_v57 }
 0x23a   :  { %v462_v60 = vadd.f32 %v460_v11, %v457_v16 }
 0x23c   :  { %464 = vst.msk [vmem:[#allocation2] sm:$0x1] %vm463_vm10, %v462_v60 }
 0x23d   :  { %551 = shalt.err (!%p548_p4)
}
 0x23e   :  { %474 = dma.vmem_to_hbm [thread:$0]  %s472_s19, 16, %s753_s1, [#allocation3]  }
 0x23f   :  { %560 = dma.done.wait [#allocation3], 16  }
 0x240   :  { %561 = vsyncadd [#allocation3], 4294967280 }
 0x241   :  { %478 = vsyncpa [#allocation3], 1 }

</bundles_post_ra>
